<compile_context>
chip_gen: v7x
topology: tpu7x:2x2x1
jax: 0.10.0
libtpu: 0.0.40
codegen_flags: <defaults>
</compile_context>

<pallas_src>
import functools

import jax
import jax.numpy as jnp
from jax.experimental import pallas as pl
from jax.experimental.pallas import tpu as pltpu

LANE = 128      # vreg lane width
SUBLANE = 8     # fp32 sublane count


def _round_up(x, m):
    return ((x + m - 1) // m) * m


def _cdiv(a, b):
    return (a + b - 1) // b


def _orthogonal(key, rows, cols, gain=0.1, dtype=jnp.float32):
    """Deterministic orthogonal init (mimics nn.init.orthogonal_ with gain)."""
    n = max(rows, cols)
    a = jax.random.normal(key, (n, n), dtype=jnp.float32)
    q, r = jnp.linalg.qr(a)
    s = jnp.sign(jnp.diag(r))
    s = jnp.where(s == 0, 1.0, s)          # clamp: never zero out a column
    q = q * s[None, :]
    return (gain * q[:rows, :cols]).astype(dtype)


def _valuenet_kernel(x_ref, w1_ref, b1_ref, w2_ref, b2_ref, w3_ref, b3_ref, o_ref):
    # Fused 3-layer MLP on one (tile, n_states) batch tile.
    # bf16 operands on the MXU, fp32 accumulate / bias / ReLU on the VPU.
    x = x_ref[...].astype(jnp.bfloat16)                               # (tile, S)
    h1 = jnp.dot(x, w1_ref[...], preferred_element_type=jnp.float32) + b1_ref[...]
    h1 = jnp.maximum(h1, 0.0)                                         # (tile, Hp) f32
    h2 = jnp.dot(h1.astype(jnp.bfloat16), w2_ref[...],
                 preferred_element_type=jnp.float32) + b2_ref[...]
    h2 = jnp.maximum(h2, 0.0)                                         # (tile, Hp) f32
    # Layer 3 on the transposed activations -> compact (1, tile) lane-dense result.
    # The fp32 transpose goes through the XLU (idle here); output HBM bytes drop 128x
    # vs. storing a (tile, 128) slab.
    h2_t = h2.T                                                       # (Hp, tile) f32
    out_row = jnp.dot(w3_ref[...], h2_t.astype(jnp.bfloat16),
                      preferred_element_type=jnp.float32) + b3_ref[...]
    o_ref[...] = out_row.astype(o_ref.dtype)                          # (1, tile) store


def _choose_tile(B, tile_b):
    """Batch tile: multiple of 128 (lane-dense output), >=2 grid steps when possible."""
    tile_b = max(LANE, _round_up(tile_b, LANE))
    b_ceil = _round_up(B, LANE)
    tile = min(tile_b, b_ceil)
    # Give the v7x megacore (2 TensorCores) at least 2 parallel grid steps when there
    # is enough work to split; no effect on single-core v5e/v6e.
    if b_ceil // tile < 2 and b_ceil >= 2 * LANE:
        tile = _round_up(_cdiv(b_ceil, 2), LANE)
    return tile


@functools.partial(jax.jit, static_argnames=("tile_b",))
def valuenet_forward(x, w1p, b1p, w2p, b2p, w3p, b3p, *, tile_b=2048):
    """x: [B, n_states] fp32; packed params from pack_valuenet_params."""
    B, n_states = x.shape
    h_pad = w1p.shape[1]

    tile = _choose_tile(B, tile_b)
    b_pad = _round_up(B, tile)
    grid = (b_pad // tile,)

    # Only the batch dim is (cheaply) padded, and only when it is ragged; the feature
    # dim stays un-padded and un-cast (cast to bf16 happens inside the kernel).
    if B != b_pad:
        x = jnp.pad(x, ((0, b_pad - B), (0, 0)))

    flops = 2 * B * (n_states * h_pad + h_pad * h_pad + h_pad)
    bytes_accessed = (
        x.size * 4                                                     # streamed fp32 x
        + sum(a.size * a.dtype.itemsize
              for a in (w1p, b1p, w2p, b2p, w3p, b3p))                 # resident params
        + b_pad * 4                                                    # compact fp32 out
    )

    def resident(shape):
        # Same block for every grid step -> stays VMEM-resident.
        return pl.BlockSpec(shape, lambda i: (0, 0))

    out_row = pl.pallas_call(
        _valuenet_kernel,
        out_shape=jax.ShapeDtypeStruct((1, b_pad), jnp.float32),
        grid=grid,
        in_specs=[
            pl.BlockSpec((tile, n_states), lambda i: (i, 0)),   # x: streamed, un-padded
            resident((n_states, h_pad)),                        # w1 (bf16)
            resident((1, h_pad)),                               # b1 (f32)
            resident((h_pad, h_pad)),                           # w2 (bf16)
            resident((1, h_pad)),                               # b2 (f32)
            resident((1, h_pad)),                               # w3 row (bf16)
            resident((1, 1)),                                   # b3 (f32)
        ],
        out_specs=pl.BlockSpec((1, tile), lambda i: (0, i)),    # lane-dense compact row
        compiler_params=pltpu.CompilerParams(
            dimension_semantics=("parallel",),                  # megacore-shardable
            vmem_limit_bytes=32 * 1024 * 1024,                  # safe on v5e/v6e/v7x
        ),
        cost_estimate=pl.CostEstimate(
            flops=flops, transcendentals=0, bytes_accessed=bytes_accessed),
    )(x, w1p, b1p, w2p, b2p, w3p, b3p)

    # Drop batch padding and restore the (B, 1) column shape.
    return out_row[0, :B][:, None]


def make_valuenet_params(key, n_states, n_hiddens, dtype=jnp.float32):
    """Raw parameters matching ValueNet.__init__ (orthogonal weights gain=0.1, zero bias).

    Weights are returned already transposed to [in, out] layout.
    """
    k1, k2, k3 = jax.random.split(key, 3)
    w1 = _orthogonal(k1, n_hiddens, n_states, dtype=dtype).T   # [n_states, n_hiddens]
    w2 = _orthogonal(k2, n_hiddens, n_hiddens, dtype=dtype).T  # [n_hiddens, n_hiddens]
    w3 = _orthogonal(k3, 1, n_hiddens, dtype=dtype).T          # [n_hiddens, 1]
    b1 = jnp.zeros((1, n_hiddens), dtype=dtype)
    b2 = jnp.zeros((1, n_hiddens), dtype=dtype)
    b3 = jnp.zeros((1, 1), dtype=dtype)
    return w1, b1, w2, b2, w3, b3


def pack_valuenet_params(w1, b1, w2, b2, w3, b3):
    """One-time packing: pad hidden dim to 128 lanes, cast matmul operands to bf16.

    Done once at parameter-creation time so the forward pass issues no pad/convert HLOs.
    """
    n_states, n_hiddens = w1.shape
    h_pad = _round_up(n_hiddens, LANE)
    hp = h_pad - n_hiddens
    bf16, f32 = jnp.bfloat16, jnp.float32
    w1p = jnp.pad(w1, ((0, 0), (0, hp))).astype(bf16)            # (n_states, h_pad)
    w2p = jnp.pad(w2, ((0, hp), (0, hp))).astype(bf16)           # (h_pad, h_pad)
    w3p = jnp.pad(w3.T, ((0, 0), (0, hp))).astype(bf16)          # (1, h_pad) row
    b1p = jnp.pad(b1.reshape(1, -1), ((0, 0), (0, hp))).astype(f32)
    b2p = jnp.pad(b2.reshape(1, -1), ((0, 0), (0, hp))).astype(f32)
    b3p = b3.reshape(1, 1).astype(f32)
    return w1p, b1p, w2p, b2p, w3p, b3p


def _reference_forward(x, w1, b1, w2, b2, w3, b3):
    """Reference with the same numerics as the kernel (bf16 operands, fp32 accumulate)."""
    bf = jnp.bfloat16
    h1 = jnp.dot(x.astype(bf), w1.astype(bf), preferred_element_type=jnp.float32) + b1
    h1 = jnp.maximum(h1, 0.0)
    h2 = jnp.dot(h1.astype(bf), w2.astype(bf), preferred_element_type=jnp.float32) + b2
    h2 = jnp.maximum(h2, 0.0)
    return jnp.dot(h2.astype(bf), w3.astype(bf), preferred_element_type=jnp.float32) + b3


if __name__ == "__main__":
    batch = 8
    n_states = 16
    n_hiddens = 32

    key = jax.random.PRNGKey(0)
    kx, kp = jax.random.split(key)
    x = jax.random.normal(kx, (batch, n_states), dtype=jnp.float32)

    raw_params = make_valuenet_params(kp, n_states, n_hiddens)
    packed_params = pack_valuenet_params(*raw_params)   # done once, outside the forward

    out = valuenet_forward(x, *packed_params)
    out = jax.block_until_ready(out)

    ref = _reference_forward(x, *raw_params)
    assert out.shape == (batch, 1), out.shape
    max_diff = jnp.max(jnp.abs(out - ref))
    assert jnp.allclose(out, ref, atol=2e-4, rtol=1e-2), (
        "mismatch vs reference, max abs diff = %s" % max_diff)

    print("KERNEL_OK")
</pallas_src>

<mosaic_0001>
module attributes {stable_mosaic.version = 11 : i64} {
  func.func @_valuenet_kernel(%arg0: i32, %arg1: memref<128x16xf32, #tpu.memory_space<vmem>>, %arg2: memref<16x128xbf16, #tpu.memory_space<vmem>>, %arg3: memref<1x128xf32, #tpu.memory_space<vmem>>, %arg4: memref<128x128xbf16, #tpu.memory_space<vmem>>, %arg5: memref<1x128xf32, #tpu.memory_space<vmem>>, %arg6: memref<1x128xbf16, #tpu.memory_space<vmem>>, %arg7: memref<1x1xf32, #tpu.memory_space<vmem>>, %arg8: memref<1x128xf32, #tpu.memory_space<vmem>>) attributes {dimension_semantics = [#tpu.dimension_semantics<parallel>], iteration_bounds = array<i64: 1>, scalar_prefetch = 0 : i64, scratch_operands = 0 : i64, tpu.core_type = #tpu.core_type<tc>, window_params = [{transform_indices = @transform_0, window_bounds = array<i64: 128, 16>}, {pipeline_mode = #tpu.pipeline_mode<synchronous>, transform_indices = @transform_1, window_bounds = array<i64: 16, 128>}, {pipeline_mode = #tpu.pipeline_mode<synchronous>, transform_indices = @transform_2, window_bounds = array<i64: 1, 128>}, {pipeline_mode = #tpu.pipeline_mode<synchronous>, transform_indices = @transform_3, window_bounds = array<i64: 128, 128>}, {pipeline_mode = #tpu.pipeline_mode<synchronous>, transform_indices = @transform_4, window_bounds = array<i64: 1, 128>}, {pipeline_mode = #tpu.pipeline_mode<synchronous>, transform_indices = @transform_5, window_bounds = array<i64: 1, 128>}, {pipeline_mode = #tpu.pipeline_mode<synchronous>, transform_indices = @transform_6, window_bounds = array<i64: 1, 1>}, {transform_indices = @transform_7, window_bounds = array<i64: 1, 128>}]} {
    %c0 = arith.constant 0 : index
    %c0_0 = arith.constant 0 : index
    %0 = vector.load %arg1[%c0, %c0_0] : memref<128x16xf32, #tpu.memory_space<vmem>>, vector<128x16xf32>
    %1 = arith.truncf %0 : vector<128x16xf32> to vector<128x16xbf16>
    %c0_1 = arith.constant 0 : index
    %c0_2 = arith.constant 0 : index
    %2 = vector.load %arg2[%c0_1, %c0_2] : memref<16x128xbf16, #tpu.memory_space<vmem>>, vector<16x128xbf16>
    %cst = arith.constant dense<0.000000e+00> : vector<128x128xf32>
    %3 = tpu.matmul %1, %2, %cst {dimension_numbers = #tpu.dot_dimension_numbers<[1], [0], [0], [1], [0, 0, 1, 1], [], []>} : vector<128x16xbf16>, vector<16x128xbf16>, vector<128x128xf32> -> vector<128x128xf32>
    %c0_3 = arith.constant 0 : index
    %c0_4 = arith.constant 0 : index
    %4 = vector.load %arg3[%c0_3, %c0_4] : memref<1x128xf32, #tpu.memory_space<vmem>>, vector<1x128xf32>
    %5 = vector.broadcast %4 : vector<1x128xf32> to vector<128x128xf32>
    %6 = arith.addf %3, %5 : vector<128x128xf32>
    %cst_5 = arith.constant 0.000000e+00 : f32
    %7 = vector.broadcast %cst_5 : f32 to vector<128x128xf32>
    %8 = arith.maximumf %6, %7 : vector<128x128xf32>
    %9 = arith.truncf %8 : vector<128x128xf32> to vector<128x128xbf16>
    %c0_6 = arith.constant 0 : index
    %c0_7 = arith.constant 0 : index
    %10 = vector.load %arg4[%c0_6, %c0_7] : memref<128x128xbf16, #tpu.memory_space<vmem>>, vector<128x128xbf16>
    %cst_8 = arith.constant dense<0.000000e+00> : vector<128x128xf32>
    %11 = tpu.matmul %9, %10, %cst_8 {dimension_numbers = #tpu.dot_dimension_numbers<[1], [0], [0], [1], [0, 0, 1, 1], [], []>} : vector<128x128xbf16>, vector<128x128xbf16>, vector<128x128xf32> -> vector<128x128xf32>
    %c0_9 = arith.constant 0 : index
    %c0_10 = arith.constant 0 : index
    %12 = vector.load %arg5[%c0_9, %c0_10] : memref<1x128xf32, #tpu.memory_space<vmem>>, vector<1x128xf32>
    %13 = vector.broadcast %12 : vector<1x128xf32> to vector<128x128xf32>
    %14 = arith.addf %11, %13 : vector<128x128xf32>
    %cst_11 = arith.constant 0.000000e+00 : f32
    %15 = vector.broadcast %cst_11 : f32 to vector<128x128xf32>
    %16 = arith.maximumf %14, %15 : vector<128x128xf32>
    %17 = tpu.transpose %16, [1, 0] : vector<128x128xf32> -> vector<128x128xf32>
    %c0_12 = arith.constant 0 : index
    %c0_13 = arith.constant 0 : index
    %18 = vector.load %arg6[%c0_12, %c0_13] : memref<1x128xbf16, #tpu.memory_space<vmem>>, vector<1x128xbf16>
    %19 = arith.truncf %17 : vector<128x128xf32> to vector<128x128xbf16>
    %cst_14 = arith.constant dense<0.000000e+00> : vector<1x128xf32>
    %20 = tpu.matmul %18, %19, %cst_14 {dimension_numbers = #tpu.dot_dimension_numbers<[1], [0], [0], [1], [0, 0, 1, 1], [], []>} : vector<1x128xbf16>, vector<128x128xbf16>, vector<1x128xf32> -> vector<1x128xf32>
    %c0_15 = arith.constant 0 : index
    %c0_16 = arith.constant 0 : index
    %21 = vector.load %arg7[%c0_15, %c0_16] : memref<1x1xf32, #tpu.memory_space<vmem>>, vector<1x1xf32>
    %22 = vector.broadcast %21 : vector<1x1xf32> to vector<1x128xf32>
    %23 = arith.addf %20, %22 : vector<1x128xf32>
    %c0_17 = arith.constant 0 : index
    %c0_18 = arith.constant 0 : index
    %24 = vector.load %arg8[%c0_17, %c0_18] : memref<1x128xf32, #tpu.memory_space<vmem>>, vector<1x128xf32>
    tpu.vector_store %arg8[%c0_17, %c0_18], %23 {strides = array<i32>} : memref<1x128xf32, #tpu.memory_space<vmem>>, vector<1x128xf32>,
    return
  }
  func.func @transform_0(%arg0: i32) -> (i32, i32) {
    %c0_i32 = arith.constant 0 : i32
    %c0_i32_0 = arith.constant 0 : i32
    return %arg0, %c0_i32 : i32, i32
  }
  func.func @transform_1(%arg0: i32) -> (i32, i32) {
    %c0_i32 = arith.constant 0 : i32
    %c0_i32_0 = arith.constant 0 : i32
    %c0_i32_1 = arith.constant 0 : i32
    return %c0_i32, %c0_i32_0 : i32, i32
  }
  func.func @transform_2(%arg0: i32) -> (i32, i32) {
    %c0_i32 = arith.constant 0 : i32
    %c0_i32_0 = arith.constant 0 : i32
    %c0_i32_1 = arith.constant 0 : i32
    return %c0_i32, %c0_i32_0 : i32, i32
  }
  func.func @transform_3(%arg0: i32) -> (i32, i32) {
    %c0_i32 = arith.constant 0 : i32
    %c0_i32_0 = arith.constant 0 : i32
    %c0_i32_1 = arith.constant 0 : i32
    return %c0_i32, %c0_i32_0 : i32, i32
  }
  func.func @transform_4(%arg0: i32) -> (i32, i32) {
    %c0_i32 = arith.constant 0 : i32
    %c0_i32_0 = arith.constant 0 : i32
    %c0_i32_1 = arith.constant 0 : i32
    return %c0_i32, %c0_i32_0 : i32, i32
  }
  func.func @transform_5(%arg0: i32) -> (i32, i32) {
    %c0_i32 = arith.constant 0 : i32
    %c0_i32_0 = arith.constant 0 : i32
    %c0_i32_1 = arith.constant 0 : i32
    return %c0_i32, %c0_i32_0 : i32, i32
  }
  func.func @transform_6(%arg0: i32) -> (i32, i32) {
    %c0_i32 = arith.constant 0 : i32
    %c0_i32_0 = arith.constant 0 : i32
    %c0_i32_1 = arith.constant 0 : i32
    return %c0_i32, %c0_i32_0 : i32, i32
  }
  func.func @transform_7(%arg0: i32) -> (i32, i32) {
    %c0_i32 = arith.constant 0 : i32
    %c0_i32_0 = arith.constant 0 : i32
    return %c0_i32, %arg0 : i32, i32
  }
}

</mosaic_0001>

<bundles_post_ra>
// kernel: valuenet_forward.1
= control target key start
LH: loop header
LB: loop body
LE: loop exit
PB: predicated region body
PF: predicated region fallthrough
CT: control target
= control target key end

     0   :  { %vm68_vm0 = vcmask 130048   ;;  %vm632_vm1 = vmmov 0   ;;  %s799_s1 = inlined_call_operand.vmem [shape: bf16[16,128], index: 1, kind: input, shape index: {}]   ;;  %s800_s0 = inlined_call_operand.vmem [shape: f32[128,16], index: 0, kind: input, shape index: {}]   ;;  %s801_s3 = inlined_call_operand.vmem [shape: bf16[128,128], index: 3, kind: input, shape index: {}]   ;;  %s802_s2 = inlined_call_operand.vmem [shape: f32[1,128], index: 2, kind: input, shape index: {}]   ;;  %s803_s4 = inlined_call_operand.vmem [shape: f32[1,128], index: 4, kind: input, shape index: {}]   ;;  %s804_s6 = inlined_call_operand.<no memory space> [shape: f32[1,1], index: 6, kind: input, shape index: {}]   ;;  %s805_s5 = inlined_call_operand.vmem [shape: bf16[1,128], index: 5, kind: input, shape index: {}]   ;;  %s806_s7 = inlined_call_operand.vmem [shape: f32[1,128], index: 7, kind: output, shape index: {}]  }
   0x1   :  { %v622_v0 = vld [vmem:[%s799_s1] sm:$0xff]   ;;  %v30_v2 = vld [vmem:[%s800_s0 + $0x8] sm:$0xff]  ;;  %v31_v3 = vld [vmem:[%s800_s0 + $0x10] sm:$0xff] }
   0x2   :  { %v29_v1 = vld [vmem:[%s800_s0] sm:$0xff]  ;;  %547 = vmatprep.subr.bf16.mxu0 %v622_v0  ;;  %v32_v5 = vld [vmem:[%s800_s0 + $0x18] sm:$0xff]  ;;  %v34_v7 = vld [vmem:[%s800_s0 + $0x28] sm:$0xff] }
   0x3   :  { %v45_v4 = vpack.c.bf16 %v30_v2, %v29_v1  ;;  %v33_v6 = vld [vmem:[%s800_s0 + $0x20] sm:$0xff]  ;;  %548 = vmatpush3.bf16.msra.mxu0 %v622_v0  ;;  %v46_v8 = vpack.c.bf16 %v32_v5, %v31_v3  ;;  %v35_v10 = vld [vmem:[%s800_s0 + $0x30] sm:$0xff]  ;;  %v36_v11 = vld [vmem:[%s800_s0 + $0x38] sm:$0xff] }
   0x4   :  { %v47_v9 = vpack.c.bf16 %v34_v7, %v33_v6  ;;  %v37_v12 = vld [vmem:[%s800_s0 + $0x40] sm:$0xff]  ;;  %v38_v13 = vld [vmem:[%s800_s0 + $0x48] sm:$0xff]  ;;  %v48_v16 = vpack.c.bf16 %v36_v11, %v35_v10  ;;  %v625_v18 = vld [vmem:[%s801_s3 + $0x10] sm:$0xff]  }
   0x5   :  { %549 = vmatprep.mubr.msk.bf16.mxu0 %vm68_vm0, %v45_v4  ;;  %v623_v14 = vld [vmem:[%s801_s3] sm:$0xff]   ;;  %v624_v15 = vld [vmem:[%s801_s3 + $0x8] sm:$0xff]   ;;  %v49_v17 = vpack.c.bf16 %v38_v13, %v37_v12  ;;  %v39_v19 = vld [vmem:[%s800_s0 + $0x50] sm:$0xff] }
   0x6   :  { %550 = vmatmul.mubr.msk.bf16.vlgmr.msra.gmra.mrb[0].mxu0 %vm68_vm0, %v46_v8  ;;  %565 = vmatprep.subr.bf16.mxu1 %v623_v14  ;;  %v40_v20 = vld [vmem:[%s800_s0 + $0x58] sm:$0xff]  ;;  %v41_v22 = vld [vmem:[%s800_s0 + $0x60] sm:$0xff]  ;;  %v42_v23 = vld [vmem:[%s800_s0 + $0x68] sm:$0xff] }
   0x7   :  { %553 = vmatprep.mubr.msk.bf16.mxu0 %vm68_vm0, %v47_v9  ;;  %566 = vmatpush3.bf16.msra.mxu1 %v623_v14  ;;  %v626_v21 = vld [vmem:[%s801_s3 + $0x18] sm:$0xff]   ;;  %v50_v24 = vpack.c.bf16 %v40_v20, %v39_v19  ;;  %v51_v25 = vpack.c.bf16 %v42_v23, %v41_v22  ;;  %v627_v26 = vld [vmem:[%s801_s3 + $0x20] sm:$0xff]   ;;  %v43_v27 = vld [vmem:[%s800_s0 + $0x70] sm:$0xff] }
   0x8   :  { %567 = vmatprep.subr.bf16.mxu1 %v624_v15  ;;  %v44_v28 = vld [vmem:[%s800_s0 + $0x78] sm:$0xff]  ;;  %v628_v29 = vld [vmem:[%s801_s3 + $0x28] sm:$0xff]   ;;  %v629_v31 = vld [vmem:[%s801_s3 + $0x30] sm:$0xff]  }
   0x9   :  { %v52_v30 = vpack.c.bf16 %v44_v28, %v43_v27  ;;  %v630_v32 = vld [vmem:[%s801_s3 + $0x38] sm:$0xff]   ;;  %v494_v33 = vld [vmem:[%s802_s2] ss:$0 sm:$0xff] }
   0xb   :  { %568 = vmatpush3.bf16.msra.mxu1 %v624_v15 }
   0xc   :  { %569 = vmatprep.subr.bf16.mxu1 %v625_v18 }
   0xe   :  { %554 = vmatmul.mubr.msk.bf16.gmra.mrb[4].mxu0 %vm68_vm0, %v48_v16 }
   0xf   :  { %557 = vmatprep.mubr.msk.bf16.mxu0 %vm68_vm0, %v49_v17  ;;  %570 = vmatpush3.bf16.msra.mxu1 %v625_v18 }
  0x10   :  { %571 = vmatprep.subr.bf16.mxu1 %v626_v21 }
  0x13   :  { %572 = vmatpush3.bf16.msra.mxu1 %v626_v21 }
  0x14   :  { %573 = vmatprep.subr.bf16.mxu1 %v627_v26 }
  0x16   :  { %558 = vmatmul.mubr.msk.bf16.gmra.mrb[8].mxu0 %vm68_vm0, %v50_v24 }
  0x17   :  { %561 = vmatprep.mubr.msk.bf16.mxu0 %vm68_vm0, %v51_v25  ;;  %574 = vmatpush3.bf16.msra.mxu1 %v627_v26  ;;  %v763_v26 = vld [vmem:[%s803_s4] ss:$0 sm:$0xff] }
  0x18   :  { %575 = vmatprep.subr.bf16.mxu1 %v628_v29 }
  0x1b   :  { %576 = vmatpush3.bf16.msra.mxu1 %v628_v29 }
  0x1c   :  { %577 = vmatprep.subr.bf16.mxu1 %v629_v31 }
  0x1e   :  { %562 = vmatmul.mubr.msk.bf16.gmra.mrb[12].mxu0 %vm68_vm0, %v52_v30 }
  0x1f   :  { %578 = vmatpush3.bf16.msra.mxu1 %v629_v31 }
  0x20   :  { %579 = vmatprep.subr.bf16.mxu1 %v630_v32 }
  0x23   :  { %580 = vmatpush3.bf16.msra.mxu1 %v630_v32 }
  0xd9   :  { %v551_v34 = vpop.f32.mrb[0].mxu0 }
  0xda   :  { %v136_v35 = vadd.f32 %v551_v34, %v494_v33  ;;  %v127_v36 = vpop.f32.mrb[1].mxu0 }
  0xdb   :  { %v128_v37 = vadd.f32 %v494_v33, %v127_v36  ;;  %v552_v38 = vpop.f32.mrb[2].mxu0 }
  0xdc   :  { %v139_v39 = vadd.f32 %v552_v38, %v494_v33  ;;  %v130_v40 = vpop.f32.mrb[3].mxu0  ;;  %v192_v42 = vmax.f32 %v136_v35, 0.0 }
  0xdd   :  { %v131_v41 = vadd.f32 %v494_v33, %v130_v40  ;;  %v190_v44 = vmax.f32 %v128_v37, 0.0 }
  0xde   :  { %v193_v43 = vmax.f32 %v139_v39, 0.0 }
  0xdf   :  { %v191_v45 = vmax.f32 %v131_v41, 0.0 }
  0xe0   :  { %v207_v46 = vpack.c.bf16 %v193_v43, %v192_v42  ;;  %v631_v42 = vmov 0.0  }
  0xe1   :  { %v555_v47 = vpop.f32.mrb[4].mxu0  ;;  %v206_v48 = vpack.c.bf16 %v191_v45, %v190_v44  ;;  %597 = vmatprep.subr.bf16.mxu0 %v631_v42  ;;  %613 = vmatprep.mubr.msk.bf16.mxu0 %vm632_vm1, %v631_v42 }
  0xe2   :  { %v152_v49 = vadd.f32 %v555_v47, %v494_v33  ;;  %v143_v50 = vpop.f32.mrb[5].mxu0 }
  0xe3   :  { %v144_v51 = vadd.f32 %v494_v33, %v143_v50  ;;  %581 = vmatprep.mubr.bf16.mxu1 %v206_v48  ;;  %v556_v52 = vpop.f32.mrb[6].mxu0 }
  0xe4   :  { %v196_v53 = vmax.f32 %v152_v49, 0.0  ;;  %v155_v54 = vadd.f32 %v556_v52, %v494_v33  ;;  %582 = vmatmul.mubr.bf16.vlgmr.msra.gmra.mrb[0].mxu1 %v207_v46  ;;  %v146_v55 = vpop.f32.mrb[7].mxu0 }
  0xe5   :  { %v194_v56 = vmax.f32 %v144_v51, 0.0  ;;  %v147_v57 = vadd.f32 %v494_v33, %v146_v55 }
  0xe6   :  { %v197_v58 = vmax.f32 %v155_v54, 0.0 }
  0xe7   :  { %v195_v59 = vmax.f32 %v147_v57, 0.0 }
  0xe8   :  { %v209_v60 = vpack.c.bf16 %v197_v58, %v196_v53 }
  0xe9   :  { %v208_v61 = vpack.c.bf16 %v195_v59, %v194_v56  ;;  %v559_v62 = vpop.f32.mrb[8].mxu0 }
  0xea   :  { %v168_v63 = vadd.f32 %v559_v62, %v494_v33  ;;  %v159_v0 = vpop.f32.mrb[9].mxu0 }
  0xeb   :  { %585 = vmatprep.mubr.bf16.mxu1 %v208_v61  ;;  %v160_v1 = vadd.f32 %v494_v33, %v159_v0  ;;  %v560_v2 = vpop.f32.mrb[10].mxu0 }
  0xec   :  { %586 = vmatmul.mubr.bf16.gmra.mrb[4].mxu1 %v209_v60  ;;  %v200_v3 = vmax.f32 %v168_v63, 0.0  ;;  %v171_v4 = vadd.f32 %v560_v2, %v494_v33  ;;  %v162_v5 = vpop.f32.mrb[11].mxu0 }
  0xed   :  { %v198_v6 = vmax.f32 %v160_v1, 0.0  ;;  %v163_v7 = vadd.f32 %v494_v33, %v162_v5 }
  0xee   :  { %v201_v8 = vmax.f32 %v171_v4, 0.0 }
  0xef   :  { %v199_v9 = vmax.f32 %v163_v7, 0.0 }
  0xf0   :  { %v211_v10 = vpack.c.bf16 %v201_v8, %v200_v3 }
  0xf1   :  { %v210_v11 = vpack.c.bf16 %v199_v9, %v198_v6  ;;  %v563_v12 = vpop.f32.mrb[12].mxu0 }
  0xf2   :  { %v184_v13 = vadd.f32 %v563_v12, %v494_v33  ;;  %v175_v14 = vpop.f32.mrb[13].mxu0  ;;  %v633_v12 = vmov 0  }
  0xf3   :  { %589 = vmatprep.mubr.bf16.mxu1 %v210_v11  ;;  %v176_v15 = vadd.f32 %v494_v33, %v175_v14  ;;  %v564_v16 = vpop.f32.mrb[14].mxu0  ;;  %620 = vset.pattern.permute.xlu1 %v633_v12 }
  0xf4   :  { %590 = vmatmul.mubr.bf16.gmra.mrb[8].mxu1 %v211_v10  ;;  %v204_v17 = vmax.f32 %v184_v13, 0.0  ;;  %v187_v18 = vadd.f32 %v564_v16, %v494_v33  ;;  %v178_v19 = vpop.f32.mrb[15].mxu0  ;;  %v12_v13 = vstv %s804_s6 }
  0xf5   :  { %v202_v20 = vmax.f32 %v176_v15, 0.0  ;;  %v179_v21 = vadd.f32 %v494_v33, %v178_v19  ;;  %13 = vst [vmem:[#allocation2] sm:$0x1] %v12_v13 }
  0xf6   :  { %v205_v22 = vmax.f32 %v187_v18, 0.0 }
  0xf7   :  { %v203_v23 = vmax.f32 %v179_v21, 0.0 }
  0xf8   :  { %v213_v24 = vpack.c.bf16 %v205_v22, %v204_v17 }
  0xf9   :  { %v212_v25 = vpack.c.bf16 %v203_v23, %v202_v20 }
  0xfb   :  { %593 = vmatprep.mubr.bf16.mxu1 %v212_v25 }
  0xfc   :  { %594 = vmatmul.mubr.bf16.gmra.mrb[12].mxu1 %v213_v24  ;;  %v439_v14 = vld [vmem:[#allocation2] sm:$0x1] }
  0xfd   :  { %442 = vperm.xlu1 %620, %v439_v14  }
 0x1b7   :  { %v583_v27 = vpop.f32.mrb[0].mxu1 }
 0x1b8   :  { %v319_v28 = vpop.f32.mrb[1].mxu1  ;;  %v328_v34 = vadd.f32 %v583_v27, %v763_v26 }
 0x1b9   :  { %v584_v29 = vpop.f32.mrb[2].mxu1  ;;  %v320_v30 = vadd.f32 %v763_v26, %v319_v28 }
 0x1ba   :  { %v322_v31 = vpop.f32.mrb[3].mxu1  ;;  %v384_v40 = vmax.f32 %v328_v34, 0.0  ;;  %v331_v41 = vadd.f32 %v584_v29, %v763_v26 }
 0x1bb   :  { %v323_v32 = vadd.f32 %v763_v26, %v322_v31  ;;  %v382_v33 = vmax.f32 %v320_v30, 0.0 }
 0x1bc   :  { %v385_v43 = vmax.f32 %v331_v41, 0.0 }
 0x1bd   :  { %398 = vxpose.xlu0.b32.start [1/16] %v382_v33, 128  ;;  %v383_v35 = vmax.f32 %v323_v32, 0.0 }
 0x1bf   :  { %v587_v36 = vpop.f32.mrb[4].mxu1 }
 0x1c0   :  { %v335_v37 = vpop.f32.mrb[5].mxu1  ;;  %v344_v51 = vadd.f32 %v587_v36, %v763_v26 }
 0x1c1   :  { %399 = vxpose.xlu0.b32.cont [2/16] %v383_v35, 128  ;;  %v588_v38 = vpop.f32.mrb[6].mxu1  ;;  %v336_v44 = vadd.f32 %v763_v26, %v335_v37 }
 0x1c2   :  { %v338_v39 = vpop.f32.mrb[7].mxu1  ;;  %v388_v57 = vmax.f32 %v344_v51, 0.0  ;;  %v347_v58 = vadd.f32 %v588_v38, %v763_v26 }
 0x1c3   :  { %v386_v49 = vmax.f32 %v336_v44, 0.0  ;;  %v339_v50 = vadd.f32 %v763_v26, %v338_v39  ;;  %v430_v39 = vld [vmem:[%s805_s5] sm:$0x1]  ;;  %v443_v44 = vpop.permute.xlu1 %442 }
 0x1c4   :  { %v389_v59 = vmax.f32 %v347_v58, 0.0 }
 0x1c5   :  { %400 = vxpose.xlu0.b32.cont [3/16] %v384_v40, 128  ;;  %v387_v52 = vmax.f32 %v339_v50, 0.0  ;;  %v445_v40 = vlaneseq }
 0x1c7   :  { %v591_v45 = vpop.f32.mrb[8].mxu1  ;;  %v446_v41 = vshrl.u32 %v445_v40, 7 }
 0x1c8   :  { %v351_v46 = vpop.f32.mrb[9].mxu1  ;;  %v360_v63 = vadd.f32 %v591_v45, %v763_v26 }
 0x1c9   :  { %401 = vxpose.xlu0.b32.cont [4/16] %v385_v43, 128  ;;  %v592_v47 = vpop.f32.mrb[10].mxu1  ;;  %v352_v60 = vadd.f32 %v763_v26, %v351_v46  ;;  %v447_v43 = vsub.s32 0, %v446_v41 }
 0x1ca   :  { %v354_v48 = vpop.f32.mrb[11].mxu1  ;;  %v392_v1 = vmax.f32 %v360_v63, 0.0  ;;  %v363_v2 = vadd.f32 %v592_v47, %v763_v26 }
 0x1cb   :  { %v390_v61 = vmax.f32 %v352_v60, 0.0  ;;  %v355_v62 = vadd.f32 %v763_v26, %v354_v48  ;;  %v448_v45 = vrot.slane %v443_v44, %v447_v43 }
 0x1cc   :  { %v393_v3 = vmax.f32 %v363_v2, 0.0 }
 0x1cd   :  { %402 = vxpose.xlu0.b32.cont [5/16] %v386_v49, 128  ;;  %v391_v0 = vmax.f32 %v355_v62, 0.0 }
 0x1cf   :  { %v595_v53 = vpop.f32.mrb[12].mxu1 }
 0x1d0   :  { %v367_v54 = vpop.f32.mrb[13].mxu1  ;;  %v376_v7 = vadd.f32 %v595_v53, %v763_v26 }
 0x1d1   :  { %403 = vxpose.xlu0.b32.cont [6/16] %v387_v52, 128  ;;  %v596_v55 = vpop.f32.mrb[14].mxu1  ;;  %v368_v4 = vadd.f32 %v763_v26, %v367_v54 }
 0x1d2   :  { %v370_v56 = vpop.f32.mrb[15].mxu1  ;;  %v396_v9 = vmax.f32 %v376_v7, 0.0  ;;  %v379_v10 = vadd.f32 %v596_v55, %v763_v26 }
 0x1d3   :  { %v394_v5 = vmax.f32 %v368_v4, 0.0  ;;  %v371_v6 = vadd.f32 %v763_v26, %v370_v56 }
 0x1d4   :  { %v397_v11 = vmax.f32 %v379_v10, 0.0 }
 0x1d5   :  { %404 = vxpose.xlu0.b32.cont [7/16] %v388_v57, 128  ;;  %v395_v8 = vmax.f32 %v371_v6, 0.0 }
 0x1d9   :  { %405 = vxpose.xlu0.b32.cont [8/16] %v389_v59, 128 }
 0x1dd   :  { %406 = vxpose.xlu0.b32.cont [9/16] %v390_v61, 128 }
 0x1e1   :  { %407 = vxpose.xlu0.b32.cont [10/16] %v391_v0, 128 }
 0x1e5   :  { %408 = vxpose.xlu0.b32.cont [11/16] %v392_v1, 128 }
 0x1e9   :  { %409 = vxpose.xlu0.b32.cont [12/16] %v393_v3, 128 }
 0x1ed   :  { %410 = vxpose.xlu0.b32.cont [13/16] %v394_v5, 128 }
 0x1f1   :  { %411 = vxpose.xlu0.b32.cont [14/16] %v395_v8, 128 }
 0x1f5   :  { %412 = vxpose.xlu0.b32.cont [15/16] %v396_v9, 128 }
 0x1f9   :  { %413 = vxpose.xlu0.b32.end [16/16] %v397_v11, 128 }
 0x222   :  { %621 = vset.pattern.permute.xlu0 %v633_v12 }
 0x23d   :  { %v414_v15 = vpop.trf.xlu0 }
 0x241   :  { %v415_v16 = vpop.trf.xlu0 }
 0x242   :  { %v431_v17 = vpack.c.bf16 %v415_v16, %v414_v15 }
 0x244   :  { %598 = vmatpush3.bf16.msra.mxu0 %v431_v17 }
 0x245   :  { %v416_v18 = vpop.trf.xlu0  ;;  %599 = vmatprep.subr.bf16.mxu0 %v631_v42 }
 0x249   :  { %v417_v19 = vpop.trf.xlu0 }
 0x24a   :  { %v432_v20 = vpack.c.bf16 %v417_v19, %v416_v18 }
 0x24c   :  { %600 = vmatpush3.bf16.msra.mxu0 %v432_v20 }
 0x24d   :  { %v418_v21 = vpop.trf.xlu0  ;;  %601 = vmatprep.subr.bf16.mxu0 %v631_v42 }
 0x251   :  { %v419_v22 = vpop.trf.xlu0 }
 0x252   :  { %v433_v23 = vpack.c.bf16 %v419_v22, %v418_v21 }
 0x254   :  { %602 = vmatpush3.bf16.msra.mxu0 %v433_v23 }
 0x255   :  { %v420_v24 = vpop.trf.xlu0  ;;  %603 = vmatprep.subr.bf16.mxu0 %v631_v42 }
 0x259   :  { %v421_v25 = vpop.trf.xlu0 }
 0x25a   :  { %v434_v26 = vpack.c.bf16 %v421_v25, %v420_v24 }
 0x25c   :  { %604 = vmatpush3.bf16.msra.mxu0 %v434_v26 }
 0x25d   :  { %v422_v27 = vpop.trf.xlu0  ;;  %605 = vmatprep.subr.bf16.mxu0 %v631_v42 }
 0x261   :  { %v423_v28 = vpop.trf.xlu0 }
 0x262   :  { %v435_v29 = vpack.c.bf16 %v423_v28, %v422_v27 }
 0x264   :  { %606 = vmatpush3.bf16.msra.mxu0 %v435_v29 }
 0x265   :  { %v424_v30 = vpop.trf.xlu0  ;;  %607 = vmatprep.subr.bf16.mxu0 %v631_v42 }
 0x269   :  { %v425_v31 = vpop.trf.xlu0 }
 0x26a   :  { %v436_v32 = vpack.c.bf16 %v425_v31, %v424_v30 }
 0x26c   :  { %608 = vmatpush3.bf16.msra.mxu0 %v436_v32 }
 0x26d   :  { %v426_v33 = vpop.trf.xlu0  ;;  %609 = vmatprep.subr.bf16.mxu0 %v631_v42 }
 0x271   :  { %v427_v34 = vpop.trf.xlu0 }
 0x272   :  { %v437_v35 = vpack.c.bf16 %v427_v34, %v426_v33 }
 0x274   :  { %610 = vmatpush3.bf16.msra.mxu0 %v437_v35 }
 0x275   :  { %v428_v36 = vpop.trf.xlu0  ;;  %611 = vmatprep.subr.bf16.mxu0 %v631_v42 }
 0x279   :  { %v429_v37 = vpop.trf.xlu0 }
 0x27a   :  { %v438_v38 = vpack.c.bf16 %v429_v37, %v428_v36 }
 0x27c   :  { %612 = vmatpush3.bf16.msra.mxu0 %v438_v38 }
 0x27f   :  { %614 = vmatmul.mubr.bf16.vlgmr.msra.gmra.mrb[16].mxu0 %v430_v39 }
 0x352   :  { %v483_v46 = vpop.f32.mrb[16].mxu0 }
 0x353   :  { %v484_v47 = vadd.f32 %v483_v46, %v448_v45  ;;  %v615_v48 = vpop.f32.mrb[17].mxu0 }
 0x354   :  { %v486_v49 = vpop.f32.mrb[18].mxu0 }
 0x355   :  { %489 = vst [vmem:[%s806_s7] sm:$0x1] %v484_v47  ;;  %v616_v42 = vpop.f32.mrb[19].mxu0 }

</bundles_post_ra>
